<compile_context>
chip_gen: v5e
topology: v5e:2x2
jax: 0.10.0
libtpu: 0.0.40
codegen_flags: <defaults>
</compile_context>

<pallas_src>
import functools

import jax
import jax.numpy as jnp
from jax.experimental import pallas as pl
from jax.experimental.pallas import tpu as pltpu


def _round_up(x, m):
    return (x + m - 1) // m * m


def highway_fused_kernel(x_ref, w_ref, b_ref, o_ref):
    """Grid = (row_tiles, layers).  The output block is resident across the
    layer axis and doubles as the activation carry.

    x_ref: (TS, Hp)   input rows (fetched once per row tile)
    w_ref: (Hp, 2*Hp) packed [Wt | Wg] for the current layer
    b_ref: (1, 2*Hp)  packed [bt | bg] for the current layer
    o_ref: (TS, Hp)   activation carry / final output
    """
    l = pl.program_id(1)
    Hp = o_ref.shape[-1]

    @pl.when(l == 0)
    def _():
        o_ref[...] = x_ref[...]

    h = o_ref[...].astype(jnp.float32)

    # One MXU pass for both branches: (TS,Hp) @ (Hp,2Hp) -> (TS,2Hp)
    z = jnp.dot(h, w_ref[...], preferred_element_type=jnp.float32) + b_ref[...]

    tran = jnp.maximum(z[:, :Hp], 0.0)                       # ReLU branch
    # sigmoid = 1 / (1 + exp(-z)): exp -> EUP, approx reciprocal -> EUP
    gate = pl.reciprocal(1.0 + jnp.exp(-z[:, Hp:]), approx=True)

    # gate*tran + (1-gate)*h  ==  h + gate*(tran - h)
    o_ref[...] = (h + gate * (tran - h)).astype(o_ref.dtype)


def pack_highway_params(params, hidden_size):
    """Pack per-layer torch-layout params into padded, concatenated tensors.

    params: list of (w_t[H,H], b_t[H], w_g[H,H], b_g[H]) in torch [out,in] layout.
    Returns w_cat [L, Hp, 2*Hp], b_cat [L, 1, 2*Hp] with Hp = round_up(H, 128).
    Padding lanes are zero, which keeps padded outputs exactly zero
    (relu(0)=0, so gate*(0-0)=0) across layers.
    """
    H = hidden_size
    Hp = max(128, _round_up(H, 128))
    L = len(params)
    w_cat = jnp.zeros((L, Hp, 2 * Hp), jnp.float32)
    b_cat = jnp.zeros((L, 1, 2 * Hp), jnp.float32)
    for l, (w_t, b_t, w_g, b_g) in enumerate(params):
        w_cat = w_cat.at[l, :H, :H].set(w_t.T)            # transform weights (in,out)
        w_cat = w_cat.at[l, :H, Hp:Hp + H].set(w_g.T)     # gate weights (in,out)
        b_cat = b_cat.at[l, 0, :H].set(b_t)
        b_cat = b_cat.at[l, 0, Hp:Hp + H].set(b_g)
    return w_cat, b_cat


@jax.jit
def highway_forward(seq, w_cat, b_cat):
    """seq: [S, H] float32.  w_cat: [L, Hp, 2*Hp].  b_cat: [L, 1, 2*Hp]."""
    S, H = seq.shape
    L, Hp, _ = w_cat.shape

    # Row tile: largest multiple of 8 up to 256 (measured ~85% HBM roofline
    # range); pad S to a multiple of it so the grid divides evenly.
    TS = min(256, _round_up(S, 8))
    Sp = _round_up(S, TS)
    n_tiles = Sp // TS

    x = jnp.zeros((Sp, Hp), seq.dtype).at[:S, :H].set(seq)

    # VMEM budget: double-buffered x + weights + bias + output blocks,
    # sized to stay within v7x's 64 MiB (cap at 48 MiB with headroom).
    block_bytes = 4 * (TS * Hp + Hp * 2 * Hp + 2 * Hp + TS * Hp)
    vmem_limit = int(min(max(2 * block_bytes + (2 << 20), 16 << 20), 48 << 20))

    cost = pl.CostEstimate(
        flops=2 * Sp * Hp * (2 * Hp) * L + 8 * Sp * Hp * L,
        transcendentals=Sp * Hp * L,
        bytes_accessed=4 * (2 * Sp * Hp + L * Hp * 2 * Hp + L * 2 * Hp),
    )

    out = pl.pallas_call(
        highway_fused_kernel,
        out_shape=jax.ShapeDtypeStruct((Sp, Hp), seq.dtype),
        grid=(n_tiles, L),
        in_specs=[
            # x rows: constant over the layer axis -> fetched once per row tile
            pl.BlockSpec((TS, Hp), lambda i, l: (i, 0)),
            # packed weights / bias for layer l (layer dim squeezed out)
            pl.BlockSpec((None, Hp, 2 * Hp), lambda i, l: (l, 0, 0)),
            pl.BlockSpec((None, 1, 2 * Hp), lambda i, l: (l, 0, 0)),
        ],
        # same output block for every layer -> resident carry, written back to
        # HBM only when the row tile changes
        out_specs=pl.BlockSpec((TS, Hp), lambda i, l: (i, 0)),
        compiler_params=pltpu.CompilerParams(
            dimension_semantics=("parallel", "arbitrary"),
            vmem_limit_bytes=vmem_limit,
        ),
        cost_estimate=cost,
    )(x, w_cat, b_cat)

    return out[:S, :H]


def init_highway_params(key, hidden_size, num_layers):
    """Deterministic init matching nn.Linear's U(-1/sqrt(H), 1/sqrt(H)),
    stored in torch layout: W [out, in], b [out]."""
    bound = 1.0 / float(hidden_size) ** 0.5
    params = []
    for _ in range(num_layers):
        key, k1, k2, k3, k4 = jax.random.split(key, 5)
        w_t = jax.random.uniform(k1, (hidden_size, hidden_size), jnp.float32, -bound, bound)
        b_t = jax.random.uniform(k2, (hidden_size,), jnp.float32, -bound, bound)
        w_g = jax.random.uniform(k3, (hidden_size, hidden_size), jnp.float32, -bound, bound)
        b_g = jax.random.uniform(k4, (hidden_size,), jnp.float32, -bound, bound)
        params.append((w_t, b_t, w_g, b_g))
    return params


def highway_ref(seq, params):
    """Pure-JAX reference (torch-layout params)."""
    for (w_t, b_t, w_g, b_g) in params:
        tran = jax.nn.relu(seq @ w_t.T + b_t)
        gate = jax.nn.sigmoid(seq @ w_g.T + b_g)
        seq = gate * tran + (1.0 - gate) * seq
    return seq


if __name__ == "__main__":
    # TODO(synk): nn.Dropout(0.2) is applied in train mode in the PyTorch
    # module; here it is treated as inference-mode identity.
    SEQ, HIDDEN, HW_LAYERS = 8, 32, 2

    key = jax.random.PRNGKey(0)
    key, kx = jax.random.split(key)
    x = jax.random.normal(kx, (SEQ, HIDDEN), jnp.float32)

    params = init_highway_params(key, HIDDEN, HW_LAYERS)
    w_cat, b_cat = pack_highway_params(params, HIDDEN)

    out = highway_forward(x, w_cat, b_cat)
    out = jax.block_until_ready(out)

    ref = highway_ref(x, params)
    assert out.shape == (SEQ, HIDDEN)
    # Slightly looser tolerance than 1e-5 because the in-kernel sigmoid uses
    # the EUP approximate reciprocal (pl.reciprocal(..., approx=True)).
    assert jnp.allclose(out, ref, atol=1e-2, rtol=1e-2), "mismatch vs reference"

    print("KERNEL_OK")
</pallas_src>

<mosaic_0001>
module attributes {stable_mosaic.version = 11 : i64} {
  func.func @highway_fused_kernel(%arg0: i32, %arg1: i32, %arg2: memref<8x128xf32, #tpu.memory_space<vmem>>, %arg3: memref<1x128x256xf32, #tpu.memory_space<vmem>>, %arg4: memref<1x1x256xf32, #tpu.memory_space<vmem>>, %arg5: memref<8x128xf32, #tpu.memory_space<vmem>>) attributes {dimension_semantics = [#tpu.dimension_semantics<parallel>, #tpu.dimension_semantics<arbitrary>], iteration_bounds = array<i64: 1, 2>, scalar_prefetch = 0 : i64, scratch_operands = 0 : i64, tpu.core_type = #tpu.core_type<tc>, window_params = [{transform_indices = @transform_0, window_bounds = array<i64: 8, 128>}, {transform_indices = @transform_1, window_bounds = array<i64: 1, 128, 256>}, {transform_indices = @transform_2, window_bounds = array<i64: 1, 1, 256>}, {transform_indices = @transform_3, window_bounds = array<i64: 8, 128>}]} {
    %c0_i32 = arith.constant 0 : i32
    %0 = arith.cmpi eq, %arg1, %c0_i32 : i32
    %1 = arith.extui %0 : i1 to i32
    %c0_i32_0 = arith.constant 0 : i32
    %2 = arith.cmpi ne, %1, %c0_i32_0 : i32
    scf.if %2 {
      %c0_13 = arith.constant 0 : index
      %c0_14 = arith.constant 0 : index
      %25 = vector.load %arg2[%c0_13, %c0_14] : memref<8x128xf32, #tpu.memory_space<vmem>>, vector<8x128xf32>
      %c0_15 = arith.constant 0 : index
      %c0_16 = arith.constant 0 : index
      %26 = vector.load %arg5[%c0_15, %c0_16] : memref<8x128xf32, #tpu.memory_space<vmem>>, vector<8x128xf32>
      tpu.vector_store %arg5[%c0_15, %c0_16], %25 {strides = array<i32>} : memref<8x128xf32, #tpu.memory_space<vmem>>, vector<8x128xf32>,
    } else {
    }
    %c0 = arith.constant 0 : index
    %c0_1 = arith.constant 0 : index
    %3 = vector.load %arg5[%c0, %c0_1] : memref<8x128xf32, #tpu.memory_space<vmem>>, vector<8x128xf32>
    %c0_2 = arith.constant 0 : index
    %c0_3 = arith.constant 0 : index
    %c0_4 = arith.constant 0 : index
    %4 = vector.load %arg3[%c0_2, %c0_3, %c0_4] : memref<1x128x256xf32, #tpu.memory_space<vmem>>, vector<1x128x256xf32>
    %5 = vector.shape_cast %4 : vector<1x128x256xf32> to vector<128x256xf32>
    %cst = arith.constant dense<0.000000e+00> : vector<8x256xf32>
    %6 = tpu.matmul %3, %5, %cst {dimension_numbers = #tpu.dot_dimension_numbers<[1], [0], [0], [1], [0, 0, 1, 1], [], []>} : vector<8x128xf32>, vector<128x256xf32>, vector<8x256xf32> -> vector<8x256xf32>
    %c0_5 = arith.constant 0 : index
    %c0_6 = arith.constant 0 : index
    %c0_7 = arith.constant 0 : index
    %7 = vector.load %arg4[%c0_5, %c0_6, %c0_7] : memref<1x1x256xf32, #tpu.memory_space<vmem>>, vector<1x1x256xf32>
    %8 = vector.shape_cast %7 : vector<1x1x256xf32> to vector<1x256xf32>
    %9 = vector.broadcast %8 : vector<1x256xf32> to vector<8x256xf32>
    %10 = arith.addf %6, %9 : vector<8x256xf32>
    %11 = vector.extract_strided_slice %10 {offsets = [0, 0], sizes = [8, 128], strides = [1, 1]} : vector<8x256xf32> to vector<8x128xf32>
    %cst_8 = arith.constant 0.000000e+00 : f32
    %12 = vector.broadcast %cst_8 : f32 to vector<8x128xf32>
    %13 = arith.maximumf %11, %12 : vector<8x128xf32>
    %14 = vector.extract_strided_slice %10 {offsets = [0, 128], sizes = [8, 128], strides = [1, 1]} : vector<8x256xf32> to vector<8x128xf32>
    %cst_9 = arith.constant 0.000000e+00 : f32
    %15 = vector.broadcast %cst_9 : f32 to vector<8x128xf32>
    %16 = arith.subf %15, %14 : vector<8x128xf32>
    %17 = math.exp %16 : vector<8x128xf32>
    %cst_10 = arith.constant 1.000000e+00 : f32
    %18 = vector.broadcast %cst_10 : f32 to vector<8x128xf32>
    %19 = arith.addf %18, %17 : vector<8x128xf32>
    %20 = tpu.reciprocal %19 {approx = true} : vector<8x128xf32> -> vector<8x128xf32>
    %21 = arith.subf %13, %3 : vector<8x128xf32>
    %22 = arith.mulf %20, %21 : vector<8x128xf32>
    %23 = arith.addf %3, %22 : vector<8x128xf32>
    %c0_11 = arith.constant 0 : index
    %c0_12 = arith.constant 0 : index
    %24 = vector.load %arg5[%c0_11, %c0_12] : memref<8x128xf32, #tpu.memory_space<vmem>>, vector<8x128xf32>
    tpu.vector_store %arg5[%c0_11, %c0_12], %23 {strides = array<i32>} : memref<8x128xf32, #tpu.memory_space<vmem>>, vector<8x128xf32>,
    return
  }
  func.func @transform_0(%arg0: i32, %arg1: i32) -> (i32, i32) {
    %c0_i32 = arith.constant 0 : i32
    %c0_i32_0 = arith.constant 0 : i32
    return %arg0, %c0_i32 : i32, i32
  }
  func.func @transform_1(%arg0: i32, %arg1: i32) -> (i32, i32, i32) {
    %c0_i32 = arith.constant 0 : i32
    %c0_i32_0 = arith.constant 0 : i32
    %c0_i32_1 = arith.constant 0 : i32
    return %arg1, %c0_i32, %c0_i32_0 : i32, i32, i32
  }
  func.func @transform_2(%arg0: i32, %arg1: i32) -> (i32, i32, i32) {
    %c0_i32 = arith.constant 0 : i32
    %c0_i32_0 = arith.constant 0 : i32
    %c0_i32_1 = arith.constant 0 : i32
    return %arg1, %c0_i32, %c0_i32_0 : i32, i32, i32
  }
  func.func @transform_3(%arg0: i32, %arg1: i32) -> (i32, i32) {
    %c0_i32 = arith.constant 0 : i32
    %c0_i32_0 = arith.constant 0 : i32
    return %arg0, %c0_i32 : i32, i32
  }
}

</mosaic_0001>

<bundles_post_ra>
// kernel: highway_forward.1
= control target key start
LH: loop header
LB: loop body
LE: loop exit
PB: predicated region body
PF: predicated region fallthrough
CT: control target
= control target key end

     0   :  { %8 = vsyncpa [#allocation3], 0  ;;  %s781_s0 = inlined_call_operand.vmem [shape: f32[8,128], index: 0, kind: input, shape index: {}]   ;;  %s782_s1 = inlined_call_operand.hbm [shape: f32[2,128,256], index: 1, kind: input, shape index: {}]   ;;  %s783_s2 = inlined_call_operand.vmem [shape: f32[2,1,256], index: 2, kind: input, shape index: {}]   ;;  %s784_s3 = inlined_call_operand.hbm [shape: f32[8,128], index: 3, kind: output, shape index: {}]  }
   0x1   :  { %10 = vsyncpa [#allocation3 + $0x1], 0 }
   0x2   :  { %11 = vsyncpa [#allocation4], 0  ;;  %s645_s12 = smov 0   ;;  %s647_s13 = smov 0  }
   0x3   :  { %s649_s14 = smov 0   ;;  %s651_s15 = smov 0  }
   0x4   :  { %s653_s16 = smov 0   ;;  %s655_s17 = smov 0  }
   0x5 LB: > { %s424_s18 = sadd.s32 4294967295, %s620_s17   ;;  %s26_s19 = sadd.s32 1, %s616_s16  ;;  %s620_s17 = sphi %s655_s17, %s17_s17   ;;  %s616_s16 = sphi %s653_s16, %s791_s16   ;;  %s612_s15 = sphi %s651_s15, %s790_s15   ;;  %s608_s14 = sphi %s649_s14, %s789_s14   ;;  %s604_s13 = sphi %s647_s13, %s788_s13   ;;  %s600_s12 = sphi %s645_s12, %s787_s12  }
   0x6   : > { %p27_p0 = scmp.ge.s32.totalorder %s26_s19, 2  ;;  %s62_s20 = sadd.s32 1, %s608_s14 }
   0x7   : > { %p69_p1 = scmp.ne.s32.totalorder %s608_s14, %s604_s13  ;;  %p70_p2 = scmp.eq.s32.totalorder %s620_s17, 0 }
   0x8   : > { %s793_s19 = smov (%p27_p0, %s26_s19), 0  ;;  %p75_p4 = scmp.ne.s32.totalorder %s604_s13, %s600_s12 }
   0x9   : > { %p681_p3 = por %p70_p2, %p69_p1  ;;  %s59_s22 = ssub.s32 %s616_s16, %s793_s19 }
   0xa   : > { %p76_p5 = scmp.eq.s32.totalorder %s424_s18, 0  ;;  %p60_p6 = scmp.eq.s32.totalorder %s59_s22, 0 }
   0xb   : > { %p450_p8 = scmp.lt.s32.totalorder %s620_s17, 2  ;;  %s158_s25 = sand.u32 1, %s608_s14  }
   0xc   : > { %p690_p7 = por %p76_p5, %p75_p4  ;;  %s439_s26 = sshll.u32 %s616_s16, 8 }
   0xd   : > { %s696_s24 = scalar_select %p60_p6, %s608_s14, %s62_s20  }
   0xe   : > { %s428_s27 = sshll.u32 %s158_s25, 8  ;;  %s167_s30 = scalar_lea.hbm %s782_s1, %s439_s26 }
   0xf   : > { %s168_s4 = sshll.u32 %s167_s30, 4  ;;  %s162_s5 = scalar_lea.vmem [#allocation2], %s428_s27  ;;  %s169_s4 = int_to_ptr.hbm [resolvable:$true] %s168_s4 }
  0x10   : > { %s170_s6 = sshll.u32 %s162_s5, 4  ;;  %p447_p9 = pnand %p450_p8, %p681_p3  ;;  %s171_s6 = int_to_ptr.vmem [resolvable:$true] %s170_s6 }
  0x11   : > { %p431_p10 = scmp.ge.s32.totalorder %s620_s17, 1  ;;  %p185_p11 = scmp.lt.s32.totalorder %s620_s17, 3 }
  0x12   : > { %s159_s7 = scalar_lea.sflag [#allocation3], %s158_s25  ;;  %s622_s8 = smov 256  }
  0x13   : > { %s623_s9 = smov 16   ;;  %p186_p12 = pnand %p431_p10, %p185_p11 }
  0x14   : > { %449 = dma.hbm_to_vmem [thread:$0]  (!%p447_p9), %s169_s4, 4096, %s171_s6, %s159_s7, %s622_s8, %s622_s8, %s623_s9  }
  0x15   : > { %189 = sbr.rel (%p186_p12) target bundleno = 225 (0xe1), region = 32  ;;  %s191_s10 = sand.u32 (!%p186_p12), 1, %s604_s13  }
  0x16   : > { %s432_s11 = sshll.u32 (!%p186_p12), %s191_s10, 8  ;;  %s192_s12 = scalar_lea.sflag (!%p186_p12), [#allocation3], %s191_s10 }
  0x17   : > { %s708_s20 = scalar_lea.vmem (!%p186_p12), [#allocation2], %s432_s11 }
  0x1a   : > { %591 = dma.done.wait (%p690_p7), %s192_s12, 4096  }
  0x1b   : > { %593 = vsyncadd (%p690_p7), %s192_s12, 4294963200  ;;  %p226_p13 = scmp.lt.s32.totalorder %s612_s15, 1  ;;  %p434_p0 = scmp.ne.s32.totalorder %s612_s15, 0 }
  0x1d   : > { %s227_s21 = scalar_select %p226_p13, %s612_s15, 1 }
  0x1e   : > { %233 = sbr.rel (%p434_p0) target bundleno = 37 (0x25), region = 40 }
  0x1f   : > { %s433_s22 = sshll.u32 %s227_s21, 1 }
  0x20   : > { %s719_s27 = scalar_lea.vmem %s783_s2, %s433_s22 }
  0x23   : > { %v234_v0 = vld [vmem:[%s781_s0] sm:$0xff] }
  0x24   : > { %235 = vst [vmem:[#allocation5] sm:$0xff] %v234_v0 }
  0x25 PF: > { %v268_v1 = vld [vmem:[%s708_s20 + $0xf8] sm:$0xff]  ;;  %v266_v2 = vld [vmem:[%s708_s20 + $0xe8] sm:$0xff]  ;;  %v267_v4 = vld [vmem:[%s708_s20 + $0xf0] sm:$0xff]  ;;  %s624_s15 = smov [#allocation5]   ;;  %s335_s5 = sshll.u32 %s784_s3, 4  ;;  %s336_s5 = int_to_ptr.hbm [resolvable:$true] %s335_s5 }
  0x26   : > { %295 = vmatpush.msra.mxu1 %v268_v1  ;;  %v264_v3 = vld [vmem:[%s708_s20 + $0xd8] sm:$0xff]  ;;  %275 = vmatpush.msra.mxu0 %v267_v4  ;;  %v265_v5 = vld [vmem:[%s708_s20 + $0xe0] sm:$0xff]  ;;  %v262_v6 = vld [vmem:[%s708_s20 + $0xc8] sm:$0xff]  ;;  %s333_s23 = sshll.u32 %s624_s15, 4  ;;  %p451_p1 = scmp.eq.s32.totalorder %s424_s18, 1  ;;  %s334_s23 = int_to_ptr.vmem [resolvable:$true] %s333_s23 }
  0x27   : > { %v263_v7 = vld [vmem:[%s708_s20 + $0xd0] sm:$0xff]  ;;  %v260_v8 = vld [vmem:[%s708_s20 + $0xb8] sm:$0xff]  ;;  %v261_v9 = vld [vmem:[%s708_s20 + $0xc0] sm:$0xff] }
  0x28   : > { %296 = vmatpush.msra.mxu1 %v266_v2  ;;  %276 = vmatpush.msra.mxu0 %v265_v5  ;;  %v258_v10 = vld [vmem:[%s708_s20 + $0xa8] sm:$0xff]  ;;  %v259_v11 = vld [vmem:[%s708_s20 + $0xb0] sm:$0xff]  ;;  %v256_v12 = vld [vmem:[%s708_s20 + $0x98] sm:$0xff] }
  0x29   : > { %v257_v13 = vld [vmem:[%s708_s20 + $0xa0] sm:$0xff]  ;;  %v254_v14 = vld [vmem:[%s708_s20 + $0x88] sm:$0xff]  ;;  %v255_v15 = vld [vmem:[%s708_s20 + $0x90] sm:$0xff] }
  0x2a   : > { %297 = vmatpush.msra.mxu1 %v264_v3  ;;  %277 = vmatpush.msra.mxu0 %v263_v7  ;;  %v252_v16 = vld [vmem:[%s708_s20 + $0x78] sm:$0xff]  ;;  %v253_v17 = vld [vmem:[%s708_s20 + $0x80] sm:$0xff]  ;;  %v250_v18 = vld [vmem:[%s708_s20 + $0x68] sm:$0xff] }
  0x2b   : > { %v251_v19 = vld [vmem:[%s708_s20 + $0x70] sm:$0xff]  ;;  %v248_v20 = vld [vmem:[%s708_s20 + $0x58] sm:$0xff]  ;;  %v249_v21 = vld [vmem:[%s708_s20 + $0x60] sm:$0xff] }
  0x2c   : > { %298 = vmatpush.msra.mxu1 %v262_v6  ;;  %278 = vmatpush.msra.mxu0 %v261_v9  ;;  %v246_v22 = vld [vmem:[%s708_s20 + $0x48] sm:$0xff]  ;;  %v247_v23 = vld [vmem:[%s708_s20 + $0x50] sm:$0xff]  ;;  %v244_v24 = vld [vmem:[%s708_s20 + $0x38] sm:$0xff] }
  0x2d   : > { %v245_v25 = vld [vmem:[%s708_s20 + $0x40] sm:$0xff]  ;;  %v242_v26 = vld [vmem:[%s708_s20 + $0x28] sm:$0xff]  ;;  %v243_v27 = vld [vmem:[%s708_s20 + $0x30] sm:$0xff] }
  0x2e   : > { %299 = vmatpush.msra.mxu1 %v260_v8  ;;  %279 = vmatpush.msra.mxu0 %v259_v11  ;;  %v240_v28 = vld [vmem:[%s708_s20 + $0x18] sm:$0xff]  ;;  %v241_v29 = vld [vmem:[%s708_s20 + $0x20] sm:$0xff]  ;;  %v238_v30 = vld [vmem:[%s708_s20 + $0x8] sm:$0xff] }
  0x2f   : > { %v239_v31 = vld [vmem:[%s708_s20 + $0x10] sm:$0xff]  ;;  %v236_v32 = vld [vmem:[#allocation5] sm:$0xff] }
  0x30   : > { %300 = vmatpush.msra.mxu1 %v258_v10  ;;  %280 = vmatpush.msra.mxu0 %v257_v13  ;;  %v237_v33 = vld [vmem:[%s708_s20] sm:$0xff] }
  0x31   : > { %v269_v34 = vld [vmem:[%s719_s27] sm:$0x3] }
  0x32   : > { %301 = vmatpush.msra.mxu1 %v256_v12  ;;  %281 = vmatpush.msra.mxu0 %v255_v15  ;;  %v272_v35 = vperm.slane %v269_v34, 1  ;;  %v271_v40 = vperm.slane %v269_v34, 0 }
  0x34   : > { %302 = vmatpush.msra.mxu1 %v254_v14  ;;  %282 = vmatpush.msra.mxu0 %v253_v17 }
  0x36   : > { %303 = vmatpush.msra.mxu1 %v252_v16  ;;  %283 = vmatpush.msra.mxu0 %v251_v19 }
  0x38   : > { %304 = vmatpush.msra.mxu1 %v250_v18  ;;  %284 = vmatpush.msra.mxu0 %v249_v21 }
  0x3a   : > { %305 = vmatpush.msra.mxu1 %v248_v20  ;;  %285 = vmatpush.msra.mxu0 %v247_v23 }
  0x3c   : > { %306 = vmatpush.msra.mxu1 %v246_v22  ;;  %286 = vmatpush.msra.mxu0 %v245_v25 }
  0x3e   : > { %307 = vmatpush.msra.mxu1 %v244_v24  ;;  %287 = vmatpush.msra.mxu0 %v243_v27 }
  0x40   : > { %308 = vmatpush.msra.mxu1 %v242_v26  ;;  %288 = vmatpush.msra.mxu0 %v241_v29 }
  0x42   : > { %309 = vmatpush.msra.mxu1 %v240_v28  ;;  %289 = vmatpush.msra.mxu0 %v239_v31 }
  0x44   : > { %310 = vmatpush.msra.mxu1 %v238_v30  ;;  %290 = vmatpush.msra.mxu0 %v237_v33 }
  0x45   : > { %311 = vmatmul.f32.vlgmr.msra.gmra.mxu1 %v236_v32  ;;  %291 = vmatmul.f32.vlgmr.msra.gmra.mxu0 %v236_v32 }
  0xc2   : > { %v312_v36 = vpop.f32.mrf.mxu1  ;;  %v292_v41 = vpop.f32.mrf.mxu0 }
  0xc3   : > { %v313_v37 = vadd.f32 %v312_v36, %v272_v35  ;;  %v293_v42 = vadd.f32 %v292_v41, %v271_v40 }
  0xc5   : > { %v316_v38 = vsub.f32 0.0, %v313_v37  ;;  %v315_v45 = vmax.f32 %v293_v42, 0.0 }
  0xc7   : > { %v317_v39 = vmul.f32 1.442695, %v316_v38  ;;  %v321_v46 = vsub.f32 %v315_v45, %v236_v32 }
  0xc9   : > { %504 = vpow2.f32 %v317_v39 }
  0xcf   : > { %v505_v43 = vpop.eup %504 }
  0xd0   : > { %v319_v44 = vadd.f32 1.0, %v505_v43 }
  0xd2   : > { %506 = vrcp.f32 %v319_v44 }
  0xd8   : > { %v507_v47 = vpop.eup %506 }
  0xd9   : > { %v322_v48 = vmul.f32 %v507_v47, %v321_v46 }
  0xdb   : > { %v323_v49 = vadd.f32 %v322_v48, %v236_v32 }
  0xdd   : > { %324 = vst [vmem:[#allocation5] sm:$0xff] %v323_v49 }
  0xde   : > { %443 = dma.vmem_to_hbm [thread:$0]  (%p451_p1), %s334_s23, 128, %s336_s5, [#allocation4]  }
  0xdf   : > { %595 = dma.done.wait (%p451_p1), [#allocation4], 128  }
  0xe0   : > { %597 = vsyncadd (%p451_p1), [#allocation4], 4294967168 }
  0xe1 PF: > { %s17_s17 = sadd.s32 1, %s620_s17   ;;  %s787_s12 = smov %s604_s13 }
  0xe2   : > { %p14_p2 = scmp.ge.s32.totalorder %s17_s17, 4   ;;  %s788_s13 = smov %s608_s14 }
  0xe3   : > { %s789_s14 = smov %s696_s24  ;;  %s790_s15 = smov %s616_s16 }
  0xe4   : > { %s791_s16 = smov %s793_s19  ;;  %16 = sbr.rel (!%p14_p2) target bundleno = 5 (0x5), region = 80 }
  0xe9   :  { %349 = vsyncpa [#allocation3], 1 }
  0xea   :  { %351 = vsyncpa [#allocation3 + $0x1], 1 }
  0xeb   :  { %352 = vsyncpa [#allocation4], 1 }
  0xec   :  { %354 = vsyncpa [#allocation4 + $0x1], 1 }

</bundles_post_ra>
